<compile_context>
chip_gen: v7x
topology: tpu7x:2x2x1
jax: 0.10.0
libtpu: 0.0.40
codegen_flags: <defaults>
</compile_context>

<pallas_src>
import functools

import numpy as np
import jax
import jax.numpy as jnp
from jax.experimental import pallas as pl
from jax.experimental.pallas import tpu as pltpu

BT = 8  # batch tile = sublane granule


def _round_up(v, m):
    return (v + m - 1) // m * m


def gru_fc_kernel(x_ref, wih_ref, whh_ref, bgi_ref, bhn_ref, wfc_ref, bfc_ref,
                  out_ref, gi_ref):
    Np = gi_ref.shape[1]           # packed gate lanes (multiple of 128)
    GW = bhn_ref.shape[1]          # per-gate lane stride == hidden-state width
    S = gi_ref.shape[0] // BT      # sequence length (static)

    # ---- Prologue: hoisted input projection for ALL timesteps of this batch
    # tile as one MXU matmul; b_ih (+ b_hh for r,z) pre-folded into bgi. ----
    gi_ref[...] = (jnp.dot(x_ref[...], wih_ref[...],
                           preferred_element_type=jnp.float32)
                   + bgi_ref[...])

    # 1-vreg loop invariant (safe to keep live across the recurrence).
    bhn = jnp.broadcast_to(bhn_ref[...], (BT, GW))

    def step(t, h):
        row = pl.multiple_of(t * BT, BT)
        gi = gi_ref[pl.ds(row, BT), :]                         # (BT, Np)
        # Re-read W_hh from VMEM each step (tiny with packed gates; vld is
        # cheap) instead of pinning a large SSA value across the unrolled loop.
        gh = jnp.dot(h, whh_ref[...], preferred_element_type=jnp.float32)
        rz = jax.nn.sigmoid(gi + gh)     # one EUP pass covers r and z lanes
        r = rz[:, 0:GW]
        z = rz[:, GW:2 * GW]
        n = jnp.tanh(gi[:, 2 * GW:3 * GW] + r * (gh[:, 2 * GW:3 * GW] + bhn))
        return n + z * (h - n)           # == (1 - z) * n + z * h

    h0 = jnp.zeros((BT, GW), jnp.float32)
    hT = jax.lax.fori_loop(0, S, step, h0, unroll=min(8, S))

    # Final Linear on the last hidden state; lane-dense (BT, Lp) output tile.
    out_ref[...] = (jnp.dot(hT, wfc_ref[...], preferred_element_type=jnp.float32)
                    + bfc_ref[...]).astype(out_ref.dtype)


def pack_gru_params(w_ih, w_hh, b_ih, b_hh, w_fc, b_fc):
    """One-time host-side re-layout of PyTorch-layout GRU/Linear weights.
       w_ih (3H,I), w_hh (3H,H), b_ih (3H,), b_hh (3H,), w_fc (L,H), b_fc (L,)."""
    w_ih = np.asarray(w_ih, np.float32)
    w_hh = np.asarray(w_hh, np.float32)
    b_ih = np.asarray(b_ih, np.float32)
    b_hh = np.asarray(b_hh, np.float32)
    w_fc = np.asarray(w_fc, np.float32)
    b_fc = np.asarray(b_fc, np.float32)

    H = w_hh.shape[1]
    I = w_ih.shape[1]
    L = w_fc.shape[0]

    # Gate lane stride: pack all three gates into a single 128-lane tile when
    # they fit, otherwise one 128-lane tile per gate (original layout).
    GW = _round_up(H, 8)
    if 3 * GW > 128:
        GW = _round_up(H, 128)
    Np = _round_up(3 * GW, 128)
    Ip = _round_up(I, 128)
    Lp = _round_up(L, 128)

    wih = np.zeros((Ip, Np), np.float32)
    whh = np.zeros((GW, Np), np.float32)
    bgi = np.zeros((1, Np), np.float32)
    bhn = np.zeros((1, GW), np.float32)
    for g in range(3):
        wih[:I, g * GW:g * GW + H] = w_ih[g * H:(g + 1) * H, :].T
        whh[:H, g * GW:g * GW + H] = w_hh[g * H:(g + 1) * H, :].T
    # Fold biases: b_ih (all gates) + b_hh (r,z) into the hoisted projection;
    # the n-gate b_hh stays separate (it is scaled by r inside the loop).
    bgi[0, 0 * GW:0 * GW + H] = b_ih[0:H] + b_hh[0:H]
    bgi[0, 1 * GW:1 * GW + H] = b_ih[H:2 * H] + b_hh[H:2 * H]
    bgi[0, 2 * GW:2 * GW + H] = b_ih[2 * H:3 * H]
    bhn[0, :H] = b_hh[2 * H:3 * H]

    wfc = np.zeros((GW, Lp), np.float32)
    wfc[:H, :L] = w_fc.T
    bfc = np.zeros((1, Lp), np.float32)
    bfc[0, :L] = b_fc

    return tuple(jnp.asarray(a) for a in (wih, whh, bgi, bhn, wfc, bfc))


@functools.partial(jax.jit, static_argnames=("num_labels",))
def gru_model_forward(x, wih, whh, bgi, bhn, wfc, bfc, *, num_labels):
    """x: (B, S, I) float32; packed weights from pack_gru_params. Returns (B, L)."""
    B, S, I = x.shape
    Ip, Np = wih.shape
    GW = whh.shape[0]
    Lp = wfc.shape[1]
    Bp = _round_up(B, BT)
    BB = Bp // BT

    # Per-call data prep: time-major, padded, grouped by batch tile so each
    # grid step (-> TensorCore on v7x) owns an independent batch slice.
    x_tm = jnp.transpose(x, (1, 0, 2)).astype(jnp.float32)            # (S,B,I)
    x_pad = jnp.zeros((S, Bp, Ip), jnp.float32).at[:, :B, :I].set(x_tm)
    x_bt = (x_pad.reshape(S, BB, BT, Ip)
                 .transpose(1, 0, 2, 3)
                 .reshape(BB, S * BT, Ip))

    # VMEM budget sized to the actual buffers (2x for pipeline buffers) + margin.
    f32 = 4
    need = (2 * f32 * (S * BT * Ip + Ip * Np + GW * Np + Np + GW
                       + GW * Lp + Lp + BT * Lp)
            + f32 * S * BT * Np + (8 << 20))
    vmem_limit = int(max(16 << 20, min(need, 64 << 20)))

    full = lambda b: (0, 0)
    out = pl.pallas_call(
        gru_fc_kernel,
        out_shape=jax.ShapeDtypeStruct((BB, BT, Lp), jnp.float32),
        grid_spec=pltpu.PrefetchScalarGridSpec(
            num_scalar_prefetch=0,
            grid=(BB,),
            in_specs=[
                pl.BlockSpec((None, S * BT, Ip), lambda b: (b, 0, 0)),  # x tile
                pl.BlockSpec((Ip, Np), full),      # W_ih^T (gate packed)
                pl.BlockSpec((GW, Np), full),      # W_hh^T (gate packed)
                pl.BlockSpec((1, Np), full),       # folded gi bias
                pl.BlockSpec((1, GW), full),       # b_hh (n gate)
                pl.BlockSpec((GW, Lp), full),      # W_fc^T
                pl.BlockSpec((1, Lp), full),       # b_fc
            ],
            out_specs=pl.BlockSpec((None, BT, Lp), lambda b: (b, 0, 0)),
            scratch_shapes=[pltpu.VMEM((S * BT, Np), jnp.float32)],     # gi_all
        ),
        compiler_params=pltpu.CompilerParams(
            dimension_semantics=("parallel",),
            vmem_limit_bytes=vmem_limit),
    )(x_bt, wih, whh, bgi, bhn, wfc, bfc)

    return out.reshape(Bp, Lp)[:B, :num_labels]


def gru_model_reference(x, w_ih, w_hh, b_ih, b_hh, w_fc, b_fc):
    """Pure-JAX reference matching torch.nn.GRU + Linear semantics."""
    B, S, I = x.shape
    H = w_hh.shape[1]

    def step(h, x_t):
        gi = x_t @ w_ih.T + b_ih
        gh = h @ w_hh.T + b_hh
        r = jax.nn.sigmoid(gi[:, :H] + gh[:, :H])
        z = jax.nn.sigmoid(gi[:, H:2 * H] + gh[:, H:2 * H])
        n = jnp.tanh(gi[:, 2 * H:] + r * gh[:, 2 * H:])
        h_new = (1.0 - z) * n + z * h
        return h_new, None

    h0 = jnp.zeros((B, H), jnp.float32)
    hT, _ = jax.lax.scan(step, h0, jnp.transpose(x, (1, 0, 2)))
    return hT @ w_fc.T + b_fc


if __name__ == "__main__":
    # Small shapes implied by the module: (batch, seq, input_size), hidden, labels.
    B, S, I, H, L = 2, 8, 16, 32, 4

    key = jax.random.PRNGKey(0)
    ks = jax.random.split(key, 7)
    bound = float(1.0 / np.sqrt(H))

    x = jax.random.normal(ks[0], (B, S, I), dtype=jnp.float32)
    w_ih = jax.random.uniform(ks[1], (3 * H, I), minval=-bound, maxval=bound)
    w_hh = jax.random.uniform(ks[2], (3 * H, H), minval=-bound, maxval=bound)
    b_ih = jax.random.uniform(ks[3], (3 * H,), minval=-bound, maxval=bound)
    b_hh = jax.random.uniform(ks[4], (3 * H,), minval=-bound, maxval=bound)
    w_fc = jax.random.uniform(ks[5], (L, H), minval=-bound, maxval=bound)
    b_fc = jax.random.uniform(ks[6], (L,), minval=-bound, maxval=bound)

    packed = pack_gru_params(w_ih, w_hh, b_ih, b_hh, w_fc, b_fc)
    out = gru_model_forward(x, *packed, num_labels=L)
    out = jax.block_until_ready(out)

    ref = gru_model_reference(x, w_ih, w_hh, b_ih, b_hh, w_fc, b_fc)
    assert out.shape == (B, L)
    assert jnp.allclose(out, ref, atol=1e-4, rtol=1e-4), "mismatch vs reference"

    print("KERNEL_OK")
</pallas_src>

<mosaic_0001>
module attributes {stable_mosaic.version = 11 : i64} {
  func.func @gru_fc_kernel(%arg0: i32, %arg1: memref<1x64x128xf32, #tpu.memory_space<vmem>>, %arg2: memref<128x128xf32, #tpu.memory_space<vmem>>, %arg3: memref<32x128xf32, #tpu.memory_space<vmem>>, %arg4: memref<1x128xf32, #tpu.memory_space<vmem>>, %arg5: memref<1x32xf32, #tpu.memory_space<vmem>>, %arg6: memref<32x128xf32, #tpu.memory_space<vmem>>, %arg7: memref<1x128xf32, #tpu.memory_space<vmem>>, %arg8: memref<1x8x128xf32, #tpu.memory_space<vmem>>, %arg9: memref<64x128xf32, #tpu.memory_space<vmem>>) attributes {dimension_semantics = [#tpu.dimension_semantics<parallel>], iteration_bounds = array<i64: 1>, scalar_prefetch = 0 : i64, scratch_operands = 1 : i64, tpu.core_type = #tpu.core_type<tc>, window_params = [{transform_indices = @transform_0, window_bounds = array<i64: 1, 64, 128>}, {pipeline_mode = #tpu.pipeline_mode<synchronous>, transform_indices = @transform_1, window_bounds = array<i64: 128, 128>}, {pipeline_mode = #tpu.pipeline_mode<synchronous>, transform_indices = @transform_2, window_bounds = array<i64: 32, 128>}, {pipeline_mode = #tpu.pipeline_mode<synchronous>, transform_indices = @transform_3, window_bounds = array<i64: 1, 128>}, {pipeline_mode = #tpu.pipeline_mode<synchronous>, transform_indices = @transform_4, window_bounds = array<i64: 1, 32>}, {pipeline_mode = #tpu.pipeline_mode<synchronous>, transform_indices = @transform_5, window_bounds = array<i64: 32, 128>}, {pipeline_mode = #tpu.pipeline_mode<synchronous>, transform_indices = @transform_6, window_bounds = array<i64: 1, 128>}, {transform_indices = @transform_7, window_bounds = array<i64: 1, 8, 128>}]} {
    %c0 = arith.constant 0 : index
    %c0_0 = arith.constant 0 : index
    %c0_1 = arith.constant 0 : index
    %0 = vector.load %arg1[%c0, %c0_0, %c0_1] : memref<1x64x128xf32, #tpu.memory_space<vmem>>, vector<1x64x128xf32>
    %1 = vector.shape_cast %0 : vector<1x64x128xf32> to vector<64x128xf32>
    %c0_2 = arith.constant 0 : index
    %c0_3 = arith.constant 0 : index
    %2 = vector.load %arg2[%c0_2, %c0_3] : memref<128x128xf32, #tpu.memory_space<vmem>>, vector<128x128xf32>
    %cst = arith.constant dense<0.000000e+00> : vector<64x128xf32>
    %3 = tpu.matmul %1, %2, %cst {dimension_numbers = #tpu.dot_dimension_numbers<[1], [0], [0], [1], [0, 0, 1, 1], [], []>} : vector<64x128xf32>, vector<128x128xf32>, vector<64x128xf32> -> vector<64x128xf32>
    %c0_4 = arith.constant 0 : index
    %c0_5 = arith.constant 0 : index
    %4 = vector.load %arg4[%c0_4, %c0_5] : memref<1x128xf32, #tpu.memory_space<vmem>>, vector<1x128xf32>
    %5 = vector.broadcast %4 : vector<1x128xf32> to vector<64x128xf32>
    %6 = arith.addf %3, %5 : vector<64x128xf32>
    %c0_6 = arith.constant 0 : index
    %c0_7 = arith.constant 0 : index
    %7 = vector.load %arg9[%c0_6, %c0_7] : memref<64x128xf32, #tpu.memory_space<vmem>>, vector<64x128xf32>
    tpu.vector_store %arg9[%c0_6, %c0_7], %6 {strides = array<i32>} : memref<64x128xf32, #tpu.memory_space<vmem>>, vector<64x128xf32>,
    %c0_8 = arith.constant 0 : index
    %c0_9 = arith.constant 0 : index
    %8 = vector.load %arg5[%c0_8, %c0_9] : memref<1x32xf32, #tpu.memory_space<vmem>>, vector<1x32xf32>
    %9 = vector.shape_cast %8 : vector<1x32xf32> to vector<1x32xf32>
    %10 = vector.broadcast %9 : vector<1x32xf32> to vector<8x32xf32>
    %cst_10 = arith.constant 0.000000e+00 : f32
    %11 = vector.broadcast %cst_10 : f32 to vector<8x32xf32>
    %c0_i32 = arith.constant 0 : i32
    %c8_i32 = arith.constant 8 : i32
    %12 = arith.muli %c0_i32, %c8_i32 : i32
    %13 = tpu.assume_multiple %12, 8 : i32
    %14 = arith.index_cast %13 : i32 to index
    %c0_11 = arith.constant 0 : index
    %15 = vector.load %arg9[%14, %c0_11] : memref<64x128xf32, #tpu.memory_space<vmem>>, vector<8x128xf32>
    %c0_12 = arith.constant 0 : index
    %c0_13 = arith.constant 0 : index
    %16 = vector.load %arg3[%c0_12, %c0_13] : memref<32x128xf32, #tpu.memory_space<vmem>>, vector<32x128xf32>
    %cst_14 = arith.constant dense<0.000000e+00> : vector<8x128xf32>
    %17 = tpu.matmul %11, %16, %cst_14 {dimension_numbers = #tpu.dot_dimension_numbers<[1], [0], [0], [1], [0, 0, 1, 1], [], []>} : vector<8x32xf32>, vector<32x128xf32>, vector<8x128xf32> -> vector<8x128xf32>
    %18 = arith.addf %15, %17 : vector<8x128xf32>
    %19 = arith.negf %18 : vector<8x128xf32>
    %20 = math.exp %19 : vector<8x128xf32>
    %cst_15 = arith.constant 1.000000e+00 : f32
    %21 = vector.broadcast %cst_15 : f32 to vector<8x128xf32>
    %22 = arith.addf %21, %20 : vector<8x128xf32>
    %23 = arith.divf %21, %22 : vector<8x128xf32>
    %24 = vector.extract_strided_slice %23 {offsets = [0, 0], sizes = [8, 32], strides = [1, 1]} : vector<8x128xf32> to vector<8x32xf32>
    %25 = vector.extract_strided_slice %23 {offsets = [0, 32], sizes = [8, 32], strides = [1, 1]} : vector<8x128xf32> to vector<8x32xf32>
    %26 = vector.extract_strided_slice %15 {offsets = [0, 64], sizes = [8, 32], strides = [1, 1]} : vector<8x128xf32> to vector<8x32xf32>
    %27 = vector.extract_strided_slice %17 {offsets = [0, 64], sizes = [8, 32], strides = [1, 1]} : vector<8x128xf32> to vector<8x32xf32>
    %28 = arith.addf %27, %10 : vector<8x32xf32>
    %29 = arith.mulf %24, %28 : vector<8x32xf32>
    %30 = arith.addf %26, %29 : vector<8x32xf32>
    %31 = math.tanh %30 : vector<8x32xf32>
    %32 = arith.subf %11, %31 : vector<8x32xf32>
    %33 = arith.mulf %25, %32 : vector<8x32xf32>
    %34 = arith.addf %31, %33 : vector<8x32xf32>
    %c1_i32 = arith.constant 1 : i32
    %c8_i32_16 = arith.constant 8 : i32
    %35 = arith.muli %c1_i32, %c8_i32_16 : i32
    %36 = tpu.assume_multiple %35, 8 : i32
    %37 = arith.index_cast %36 : i32 to index
    %c0_17 = arith.constant 0 : index
    %38 = vector.load %arg9[%37, %c0_17] : memref<64x128xf32, #tpu.memory_space<vmem>>, vector<8x128xf32>
    %c0_18 = arith.constant 0 : index
    %c0_19 = arith.constant 0 : index
    %39 = vector.load %arg3[%c0_18, %c0_19] : memref<32x128xf32, #tpu.memory_space<vmem>>, vector<32x128xf32>
    %cst_20 = arith.constant dense<0.000000e+00> : vector<8x128xf32>
    %40 = tpu.matmul %34, %39, %cst_20 {dimension_numbers = #tpu.dot_dimension_numbers<[1], [0], [0], [1], [0, 0, 1, 1], [], []>} : vector<8x32xf32>, vector<32x128xf32>, vector<8x128xf32> -> vector<8x128xf32>
    %41 = arith.addf %38, %40 : vector<8x128xf32>
    %42 = arith.negf %41 : vector<8x128xf32>
    %43 = math.exp %42 : vector<8x128xf32>
    %cst_21 = arith.constant 1.000000e+00 : f32
    %44 = vector.broadcast %cst_21 : f32 to vector<8x128xf32>
    %45 = arith.addf %44, %43 : vector<8x128xf32>
    %46 = arith.divf %44, %45 : vector<8x128xf32>
    %47 = vector.extract_strided_slice %46 {offsets = [0, 0], sizes = [8, 32], strides = [1, 1]} : vector<8x128xf32> to vector<8x32xf32>
    %48 = vector.extract_strided_slice %46 {offsets = [0, 32], sizes = [8, 32], strides = [1, 1]} : vector<8x128xf32> to vector<8x32xf32>
    %49 = vector.extract_strided_slice %38 {offsets = [0, 64], sizes = [8, 32], strides = [1, 1]} : vector<8x128xf32> to vector<8x32xf32>
    %50 = vector.extract_strided_slice %40 {offsets = [0, 64], sizes = [8, 32], strides = [1, 1]} : vector<8x128xf32> to vector<8x32xf32>
    %51 = arith.addf %50, %10 : vector<8x32xf32>
    %52 = arith.mulf %47, %51 : vector<8x32xf32>
    %53 = arith.addf %49, %52 : vector<8x32xf32>
    %54 = math.tanh %53 : vector<8x32xf32>
    %55 = arith.subf %34, %54 : vector<8x32xf32>
    %56 = arith.mulf %48, %55 : vector<8x32xf32>
    %57 = arith.addf %54, %56 : vector<8x32xf32>
    %c2_i32 = arith.constant 2 : i32
    %c8_i32_22 = arith.constant 8 : i32
    %58 = arith.muli %c2_i32, %c8_i32_22 : i32
    %59 = tpu.assume_multiple %58, 8 : i32
    %60 = arith.index_cast %59 : i32 to index
    %c0_23 = arith.constant 0 : index
    %61 = vector.load %arg9[%60, %c0_23] : memref<64x128xf32, #tpu.memory_space<vmem>>, vector<8x128xf32>
    %c0_24 = arith.constant 0 : index
    %c0_25 = arith.constant 0 : index
    %62 = vector.load %arg3[%c0_24, %c0_25] : memref<32x128xf32, #tpu.memory_space<vmem>>, vector<32x128xf32>
    %cst_26 = arith.constant dense<0.000000e+00> : vector<8x128xf32>
    %63 = tpu.matmul %57, %62, %cst_26 {dimension_numbers = #tpu.dot_dimension_numbers<[1], [0], [0], [1], [0, 0, 1, 1], [], []>} : vector<8x32xf32>, vector<32x128xf32>, vector<8x128xf32> -> vector<8x128xf32>
    %64 = arith.addf %61, %63 : vector<8x128xf32>
    %65 = arith.negf %64 : vector<8x128xf32>
    %66 = math.exp %65 : vector<8x128xf32>
    %cst_27 = arith.constant 1.000000e+00 : f32
    %67 = vector.broadcast %cst_27 : f32 to vector<8x128xf32>
    %68 = arith.addf %67, %66 : vector<8x128xf32>
    %69 = arith.divf %67, %68 : vector<8x128xf32>
    %70 = vector.extract_strided_slice %69 {offsets = [0, 0], sizes = [8, 32], strides = [1, 1]} : vector<8x128xf32> to vector<8x32xf32>
    %71 = vector.extract_strided_slice %69 {offsets = [0, 32], sizes = [8, 32], strides = [1, 1]} : vector<8x128xf32> to vector<8x32xf32>
    %72 = vector.extract_strided_slice %61 {offsets = [0, 64], sizes = [8, 32], strides = [1, 1]} : vector<8x128xf32> to vector<8x32xf32>
    %73 = vector.extract_strided_slice %63 {offsets = [0, 64], sizes = [8, 32], strides = [1, 1]} : vector<8x128xf32> to vector<8x32xf32>
    %74 = arith.addf %73, %10 : vector<8x32xf32>
    %75 = arith.mulf %70, %74 : vector<8x32xf32>
    %76 = arith.addf %72, %75 : vector<8x32xf32>
    %77 = math.tanh %76 : vector<8x32xf32>
    %78 = arith.subf %57, %77 : vector<8x32xf32>
    %79 = arith.mulf %71, %78 : vector<8x32xf32>
    %80 = arith.addf %77, %79 : vector<8x32xf32>
    %c3_i32 = arith.constant 3 : i32
    %c8_i32_28 = arith.constant 8 : i32
    %81 = arith.muli %c3_i32, %c8_i32_28 : i32
    %82 = tpu.assume_multiple %81, 8 : i32
    %83 = arith.index_cast %82 : i32 to index
    %c0_29 = arith.constant 0 : index
    %84 = vector.load %arg9[%83, %c0_29] : memref<64x128xf32, #tpu.memory_space<vmem>>, vector<8x128xf32>
    %c0_30 = arith.constant 0 : index
    %c0_31 = arith.constant 0 : index
    %85 = vector.load %arg3[%c0_30, %c0_31] : memref<32x128xf32, #tpu.memory_space<vmem>>, vector<32x128xf32>
    %cst_32 = arith.constant dense<0.000000e+00> : vector<8x128xf32>
    %86 = tpu.matmul %80, %85, %cst_32 {dimension_numbers = #tpu.dot_dimension_numbers<[1], [0], [0], [1], [0, 0, 1, 1], [], []>} : vector<8x32xf32>, vector<32x128xf32>, vector<8x128xf32> -> vector<8x128xf32>
    %87 = arith.addf %84, %86 : vector<8x128xf32>
    %88 = arith.negf %87 : vector<8x128xf32>
    %89 = math.exp %88 : vector<8x128xf32>
    %cst_33 = arith.constant 1.000000e+00 : f32
    %90 = vector.broadcast %cst_33 : f32 to vector<8x128xf32>
    %91 = arith.addf %90, %89 : vector<8x128xf32>
    %92 = arith.divf %90, %91 : vector<8x128xf32>
    %93 = vector.extract_strided_slice %92 {offsets = [0, 0], sizes = [8, 32], strides = [1, 1]} : vector<8x128xf32> to vector<8x32xf32>
    %94 = vector.extract_strided_slice %92 {offsets = [0, 32], sizes = [8, 32], strides = [1, 1]} : vector<8x128xf32> to vector<8x32xf32>
    %95 = vector.extract_strided_slice %84 {offsets = [0, 64], sizes = [8, 32], strides = [1, 1]} : vector<8x128xf32> to vector<8x32xf32>
    %96 = vector.extract_strided_slice %86 {offsets = [0, 64], sizes = [8, 32], strides = [1, 1]} : vector<8x128xf32> to vector<8x32xf32>
    %97 = arith.addf %96, %10 : vector<8x32xf32>
    %98 = arith.mulf %93, %97 : vector<8x32xf32>
    %99 = arith.addf %95, %98 : vector<8x32xf32>
    %100 = math.tanh %99 : vector<8x32xf32>
    %101 = arith.subf %80, %100 : vector<8x32xf32>
    %102 = arith.mulf %94, %101 : vector<8x32xf32>
    %103 = arith.addf %100, %102 : vector<8x32xf32>
    %c4_i32 = arith.constant 4 : i32
    %c8_i32_34 = arith.constant 8 : i32
    %104 = arith.muli %c4_i32, %c8_i32_34 : i32
    %105 = tpu.assume_multiple %104, 8 : i32
    %106 = arith.index_cast %105 : i32 to index
    %c0_35 = arith.constant 0 : index
    %107 = vector.load %arg9[%106, %c0_35] : memref<64x128xf32, #tpu.memory_space<vmem>>, vector<8x128xf32>
    %c0_36 = arith.constant 0 : index
    %c0_37 = arith.constant 0 : index
    %108 = vector.load %arg3[%c0_36, %c0_37] : memref<32x128xf32, #tpu.memory_space<vmem>>, vector<32x128xf32>
    %cst_38 = arith.constant dense<0.000000e+00> : vector<8x128xf32>
    %109 = tpu.matmul %103, %108, %cst_38 {dimension_numbers = #tpu.dot_dimension_numbers<[1], [0], [0], [1], [0, 0, 1, 1], [], []>} : vector<8x32xf32>, vector<32x128xf32>, vector<8x128xf32> -> vector<8x128xf32>
    %110 = arith.addf %107, %109 : vector<8x128xf32>
    %111 = arith.negf %110 : vector<8x128xf32>
    %112 = math.exp %111 : vector<8x128xf32>
    %cst_39 = arith.constant 1.000000e+00 : f32
    %113 = vector.broadcast %cst_39 : f32 to vector<8x128xf32>
    %114 = arith.addf %113, %112 : vector<8x128xf32>
    %115 = arith.divf %113, %114 : vector<8x128xf32>
    %116 = vector.extract_strided_slice %115 {offsets = [0, 0], sizes = [8, 32], strides = [1, 1]} : vector<8x128xf32> to vector<8x32xf32>
    %117 = vector.extract_strided_slice %115 {offsets = [0, 32], sizes = [8, 32], strides = [1, 1]} : vector<8x128xf32> to vector<8x32xf32>
    %118 = vector.extract_strided_slice %107 {offsets = [0, 64], sizes = [8, 32], strides = [1, 1]} : vector<8x128xf32> to vector<8x32xf32>
    %119 = vector.extract_strided_slice %109 {offsets = [0, 64], sizes = [8, 32], strides = [1, 1]} : vector<8x128xf32> to vector<8x32xf32>
    %120 = arith.addf %119, %10 : vector<8x32xf32>
    %121 = arith.mulf %116, %120 : vector<8x32xf32>
    %122 = arith.addf %118, %121 : vector<8x32xf32>
    %123 = math.tanh %122 : vector<8x32xf32>
    %124 = arith.subf %103, %123 : vector<8x32xf32>
    %125 = arith.mulf %117, %124 : vector<8x32xf32>
    %126 = arith.addf %123, %125 : vector<8x32xf32>
    %c5_i32 = arith.constant 5 : i32
    %c8_i32_40 = arith.constant 8 : i32
    %127 = arith.muli %c5_i32, %c8_i32_40 : i32
    %128 = tpu.assume_multiple %127, 8 : i32
    %129 = arith.index_cast %128 : i32 to index
    %c0_41 = arith.constant 0 : index
    %130 = vector.load %arg9[%129, %c0_41] : memref<64x128xf32, #tpu.memory_space<vmem>>, vector<8x128xf32>
    %c0_42 = arith.constant 0 : index
    %c0_43 = arith.constant 0 : index
    %131 = vector.load %arg3[%c0_42, %c0_43] : memref<32x128xf32, #tpu.memory_space<vmem>>, vector<32x128xf32>
    %cst_44 = arith.constant dense<0.000000e+00> : vector<8x128xf32>
    %132 = tpu.matmul %126, %131, %cst_44 {dimension_numbers = #tpu.dot_dimension_numbers<[1], [0], [0], [1], [0, 0, 1, 1], [], []>} : vector<8x32xf32>, vector<32x128xf32>, vector<8x128xf32> -> vector<8x128xf32>
    %133 = arith.addf %130, %132 : vector<8x128xf32>
    %134 = arith.negf %133 : vector<8x128xf32>
    %135 = math.exp %134 : vector<8x128xf32>
    %cst_45 = arith.constant 1.000000e+00 : f32
    %136 = vector.broadcast %cst_45 : f32 to vector<8x128xf32>
    %137 = arith.addf %136, %135 : vector<8x128xf32>
    %138 = arith.divf %136, %137 : vector<8x128xf32>
    %139 = vector.extract_strided_slice %138 {offsets = [0, 0], sizes = [8, 32], strides = [1, 1]} : vector<8x128xf32> to vector<8x32xf32>
    %140 = vector.extract_strided_slice %138 {offsets = [0, 32], sizes = [8, 32], strides = [1, 1]} : vector<8x128xf32> to vector<8x32xf32>
    %141 = vector.extract_strided_slice %130 {offsets = [0, 64], sizes = [8, 32], strides = [1, 1]} : vector<8x128xf32> to vector<8x32xf32>
    %142 = vector.extract_strided_slice %132 {offsets = [0, 64], sizes = [8, 32], strides = [1, 1]} : vector<8x128xf32> to vector<8x32xf32>
    %143 = arith.addf %142, %10 : vector<8x32xf32>
    %144 = arith.mulf %139, %143 : vector<8x32xf32>
    %145 = arith.addf %141, %144 : vector<8x32xf32>
    %146 = math.tanh %145 : vector<8x32xf32>
    %147 = arith.subf %126, %146 : vector<8x32xf32>
    %148 = arith.mulf %140, %147 : vector<8x32xf32>
    %149 = arith.addf %146, %148 : vector<8x32xf32>
    %c6_i32 = arith.constant 6 : i32
    %c8_i32_46 = arith.constant 8 : i32
    %150 = arith.muli %c6_i32, %c8_i32_46 : i32
    %151 = tpu.assume_multiple %150, 8 : i32
    %152 = arith.index_cast %151 : i32 to index
    %c0_47 = arith.constant 0 : index
    %153 = vector.load %arg9[%152, %c0_47] : memref<64x128xf32, #tpu.memory_space<vmem>>, vector<8x128xf32>
    %c0_48 = arith.constant 0 : index
    %c0_49 = arith.constant 0 : index
    %154 = vector.load %arg3[%c0_48, %c0_49] : memref<32x128xf32, #tpu.memory_space<vmem>>, vector<32x128xf32>
    %cst_50 = arith.constant dense<0.000000e+00> : vector<8x128xf32>
    %155 = tpu.matmul %149, %154, %cst_50 {dimension_numbers = #tpu.dot_dimension_numbers<[1], [0], [0], [1], [0, 0, 1, 1], [], []>} : vector<8x32xf32>, vector<32x128xf32>, vector<8x128xf32> -> vector<8x128xf32>
    %156 = arith.addf %153, %155 : vector<8x128xf32>
    %157 = arith.negf %156 : vector<8x128xf32>
    %158 = math.exp %157 : vector<8x128xf32>
    %cst_51 = arith.constant 1.000000e+00 : f32
    %159 = vector.broadcast %cst_51 : f32 to vector<8x128xf32>
    %160 = arith.addf %159, %158 : vector<8x128xf32>
    %161 = arith.divf %159, %160 : vector<8x128xf32>
    %162 = vector.extract_strided_slice %161 {offsets = [0, 0], sizes = [8, 32], strides = [1, 1]} : vector<8x128xf32> to vector<8x32xf32>
    %163 = vector.extract_strided_slice %161 {offsets = [0, 32], sizes = [8, 32], strides = [1, 1]} : vector<8x128xf32> to vector<8x32xf32>
    %164 = vector.extract_strided_slice %153 {offsets = [0, 64], sizes = [8, 32], strides = [1, 1]} : vector<8x128xf32> to vector<8x32xf32>
    %165 = vector.extract_strided_slice %155 {offsets = [0, 64], sizes = [8, 32], strides = [1, 1]} : vector<8x128xf32> to vector<8x32xf32>
    %166 = arith.addf %165, %10 : vector<8x32xf32>
    %167 = arith.mulf %162, %166 : vector<8x32xf32>
    %168 = arith.addf %164, %167 : vector<8x32xf32>
    %169 = math.tanh %168 : vector<8x32xf32>
    %170 = arith.subf %149, %169 : vector<8x32xf32>
    %171 = arith.mulf %163, %170 : vector<8x32xf32>
    %172 = arith.addf %169, %171 : vector<8x32xf32>
    %c7_i32 = arith.constant 7 : i32
    %c8_i32_52 = arith.constant 8 : i32
    %173 = arith.muli %c7_i32, %c8_i32_52 : i32
    %174 = tpu.assume_multiple %173, 8 : i32
    %175 = arith.index_cast %174 : i32 to index
    %c0_53 = arith.constant 0 : index
    %176 = vector.load %arg9[%175, %c0_53] : memref<64x128xf32, #tpu.memory_space<vmem>>, vector<8x128xf32>
    %c0_54 = arith.constant 0 : index
    %c0_55 = arith.constant 0 : index
    %177 = vector.load %arg3[%c0_54, %c0_55] : memref<32x128xf32, #tpu.memory_space<vmem>>, vector<32x128xf32>
    %cst_56 = arith.constant dense<0.000000e+00> : vector<8x128xf32>
    %178 = tpu.matmul %172, %177, %cst_56 {dimension_numbers = #tpu.dot_dimension_numbers<[1], [0], [0], [1], [0, 0, 1, 1], [], []>} : vector<8x32xf32>, vector<32x128xf32>, vector<8x128xf32> -> vector<8x128xf32>
    %179 = arith.addf %176, %178 : vector<8x128xf32>
    %180 = arith.negf %179 : vector<8x128xf32>
    %181 = math.exp %180 : vector<8x128xf32>
    %cst_57 = arith.constant 1.000000e+00 : f32
    %182 = vector.broadcast %cst_57 : f32 to vector<8x128xf32>
    %183 = arith.addf %182, %181 : vector<8x128xf32>
    %184 = arith.divf %182, %183 : vector<8x128xf32>
    %185 = vector.extract_strided_slice %184 {offsets = [0, 0], sizes = [8, 32], strides = [1, 1]} : vector<8x128xf32> to vector<8x32xf32>
    %186 = vector.extract_strided_slice %184 {offsets = [0, 32], sizes = [8, 32], strides = [1, 1]} : vector<8x128xf32> to vector<8x32xf32>
    %187 = vector.extract_strided_slice %176 {offsets = [0, 64], sizes = [8, 32], strides = [1, 1]} : vector<8x128xf32> to vector<8x32xf32>
    %188 = vector.extract_strided_slice %178 {offsets = [0, 64], sizes = [8, 32], strides = [1, 1]} : vector<8x128xf32> to vector<8x32xf32>
    %189 = arith.addf %188, %10 : vector<8x32xf32>
    %190 = arith.mulf %185, %189 : vector<8x32xf32>
    %191 = arith.addf %187, %190 : vector<8x32xf32>
    %192 = math.tanh %191 : vector<8x32xf32>
    %193 = arith.subf %172, %192 : vector<8x32xf32>
    %194 = arith.mulf %186, %193 : vector<8x32xf32>
    %195 = arith.addf %192, %194 : vector<8x32xf32>
    %c8_i32_58 = arith.constant 8 : i32
    %c0_59 = arith.constant 0 : index
    %c0_60 = arith.constant 0 : index
    %196 = vector.load %arg6[%c0_59, %c0_60] : memref<32x128xf32, #tpu.memory_space<vmem>>, vector<32x128xf32>
    %cst_61 = arith.constant dense<0.000000e+00> : vector<8x128xf32>
    %197 = tpu.matmul %195, %196, %cst_61 {dimension_numbers = #tpu.dot_dimension_numbers<[1], [0], [0], [1], [0, 0, 1, 1], [], []>} : vector<8x32xf32>, vector<32x128xf32>, vector<8x128xf32> -> vector<8x128xf32>
    %c0_62 = arith.constant 0 : index
    %c0_63 = arith.constant 0 : index
    %198 = vector.load %arg7[%c0_62, %c0_63] : memref<1x128xf32, #tpu.memory_space<vmem>>, vector<1x128xf32>
    %199 = vector.broadcast %198 : vector<1x128xf32> to vector<8x128xf32>
    %200 = arith.addf %197, %199 : vector<8x128xf32>
    %c0_64 = arith.constant 0 : index
    %c0_65 = arith.constant 0 : index
    %c0_66 = arith.constant 0 : index
    %201 = vector.load %arg8[%c0_64, %c0_65, %c0_66] : memref<1x8x128xf32, #tpu.memory_space<vmem>>, vector<1x8x128xf32>
    %202 = vector.shape_cast %201 : vector<1x8x128xf32> to vector<8x128xf32>
    %203 = vector.shape_cast %200 : vector<8x128xf32> to vector<1x8x128xf32>
    tpu.vector_store %arg8[%c0_64, %c0_65, %c0_66], %203 {strides = array<i32>} : memref<1x8x128xf32, #tpu.memory_space<vmem>>, vector<1x8x128xf32>,
    return
  }
  func.func @transform_0(%arg0: i32) -> (i32, i32, i32) {
    %c0_i32 = arith.constant 0 : i32
    %c0_i32_0 = arith.constant 0 : i32
    %c0_i32_1 = arith.constant 0 : i32
    return %arg0, %c0_i32, %c0_i32_0 : i32, i32, i32
  }
  func.func @transform_1(%arg0: i32) -> (i32, i32) {
    %c0_i32 = arith.constant 0 : i32
    %c0_i32_0 = arith.constant 0 : i32
    %c0_i32_1 = arith.constant 0 : i32
    return %c0_i32, %c0_i32_0 : i32, i32
  }
  func.func @transform_2(%arg0: i32) -> (i32, i32) {
    %c0_i32 = arith.constant 0 : i32
    %c0_i32_0 = arith.constant 0 : i32
    %c0_i32_1 = arith.constant 0 : i32
    return %c0_i32, %c0_i32_0 : i32, i32
  }
  func.func @transform_3(%arg0: i32) -> (i32, i32) {
    %c0_i32 = arith.constant 0 : i32
    %c0_i32_0 = arith.constant 0 : i32
    %c0_i32_1 = arith.constant 0 : i32
    return %c0_i32, %c0_i32_0 : i32, i32
  }
  func.func @transform_4(%arg0: i32) -> (i32, i32) {
    %c0_i32 = arith.constant 0 : i32
    %c0_i32_0 = arith.constant 0 : i32
    %c0_i32_1 = arith.constant 0 : i32
    return %c0_i32, %c0_i32_0 : i32, i32
  }
  func.func @transform_5(%arg0: i32) -> (i32, i32) {
    %c0_i32 = arith.constant 0 : i32
    %c0_i32_0 = arith.constant 0 : i32
    %c0_i32_1 = arith.constant 0 : i32
    return %c0_i32, %c0_i32_0 : i32, i32
  }
  func.func @transform_6(%arg0: i32) -> (i32, i32) {
    %c0_i32 = arith.constant 0 : i32
    %c0_i32_0 = arith.constant 0 : i32
    %c0_i32_1 = arith.constant 0 : i32
    return %c0_i32, %c0_i32_0 : i32, i32
  }
  func.func @transform_7(%arg0: i32) -> (i32, i32, i32) {
    %c0_i32 = arith.constant 0 : i32
    %c0_i32_0 = arith.constant 0 : i32
    %c0_i32_1 = arith.constant 0 : i32
    return %arg0, %c0_i32, %c0_i32_0 : i32, i32, i32
  }
}

</mosaic_0001>

<bundles_post_ra>
// kernel: gru_model_forward.1
= control target key start
LH: loop header
LB: loop body
LE: loop exit
PB: predicated region body
PF: predicated region fallthrough
CT: control target
= control target key end

     0   :  { %12 = vsyncpa [#allocation4], 0  ;;  %s1541_s24 = smov [#allocation3]   ;;  %s1791_s0 = inlined_call_operand.vmem [shape: f32[1,64,128], index: 0, kind: input, shape index: {}]   ;;  %s1792_s1 = inlined_call_operand.hbm [shape: f32[128,128], index: 1, kind: input, shape index: {}]   ;;  %s1793_s2 = inlined_call_operand.vmem [shape: f32[32,128], index: 2, kind: input, shape index: {}]   ;;  %s1794_s3 = inlined_call_operand.vmem [shape: f32[1,128], index: 3, kind: input, shape index: {}]   ;;  %s1795_s4 = inlined_call_operand.vmem [shape: f32[1,32], index: 4, kind: input, shape index: {}]   ;;  %s1796_s5 = inlined_call_operand.vmem [shape: f32[32,128], index: 5, kind: input, shape index: {}]   ;;  %s1797_s6 = inlined_call_operand.vmem [shape: f32[1,128], index: 6, kind: input, shape index: {}]   ;;  %s1798_s7 = inlined_call_operand.vmem [shape: f32[1,8,128], index: 7, kind: output, shape index: {}]  }
   0x1   :  { %s20_s25 = sshll.u32 %s1541_s24, 4  ;;  %s1517_s28 = scalar_lea.hbm %s1792_s1, 2048  ;;  %s21_s25 = int_to_ptr.vmem [resolvable:$true] %s20_s25 }
   0x2   :  { %p1518_p0 = scmp.ne.s32.totalorder %s1792_s1, %s1517_s28  ;;  %p1521_p1 = scmp.lt.u32.totalorder %s1517_s28, %s1792_s1 }
   0x4   :  { %p1523_p2 = pnand %p1521_p1, %p1518_p0 }
   0x6   :  { %1526 = shalt.err (!%p1523_p2)
}
   0x7   :  { %s1527_s10 = scalar_lea.vmem %s21_s25, 2048  ;;  %p1532_p4 = scmp.lt.s32.totalorder %s21_s25, %s21_s25 }
   0x8   :  { %p1528_p3 = scmp.ne.s32.totalorder %s21_s25, %s1527_s10  ;;  %p1533_p5 = scmp.lt.s32.totalorder %s1527_s10, %s1527_s10 }
   0xa   :  { %p1534_p6 = por %p1533_p5, %p1532_p4 }
   0xc   :  { %p1535_p7 = pnand %p1534_p6, %p1528_p3 }
   0xe   :  { %1538 = shalt.err (!%p1535_p7)
}
   0xf   :  { %s1542_s11 = smov 128   ;;  %s1543_s12 = smov 8  }
  0x10   :  { %26 = dma.hbm_to_vmem [thread:$0]  %s1792_s1, 2048, %s21_s25, [#allocation4], %s1542_s11, %s1542_s11, %s1543_s12  }
  0x11   :  { %1539 = dma.done.wait [#allocation4], 2048  }
  0x12   :  { %1540 = vsyncadd [#allocation4], 4294965248  ;;  %v1544_v0 = vmov 0.0|0.0   ;;  %vm1545_vm0 = vmmov 0   ;;  %v1546_v1 = vmov 0.0   ;;  %v48_v2 = vld [vmem:[#allocation3] sm:$0xff] }
  0x13   :  { %1406 = vmatprep.subr.bf16.mxu1 %v1544_v0  ;;  %1283 = vmatprep.mubr.msk.f32.mxu1 %vm1545_vm0, %v1546_v1  ;;  %v49_v3 = vld [vmem:[#allocation3 + $0x8] sm:$0xff]  ;;  %v191_v4 = vld [vmem:[%s1793_s2] sm:$0xff]  ;;  %v50_v7 = vld [vmem:[#allocation3 + $0x10] sm:$0xff]  ;;  %s1547_s25 = smov 64   ;;  %s1549_s29 = smov 32   ;;  %vm195_vm1 = vcmask 261120  }
  0x14   :  { %v1374_v5 = vpack.c.bf16 %v49_v3, %v48_v2  ;;  %v192_v6 = vld [vmem:[%s1793_s2 + $0x8] sm:$0xff]  ;;  %v51_v8 = vld [vmem:[#allocation3 + $0x18] sm:$0xff]  ;;  %v193_v11 = vld [vmem:[%s1793_s2 + $0x10] sm:$0xff] }
  0x15   :  { %v1611_v9 = vpack.c.bf16 %v192_v6, %v191_v4  ;;  %v1378_v10 = vpack.c.bf16 %v51_v8, %v50_v7  ;;  %v194_v12 = vld [vmem:[%s1793_s2 + $0x18] sm:$0xff]  ;;  %v52_v13 = vld [vmem:[#allocation3 + $0x20] sm:$0xff]  ;;  %v53_v14 = vld [vmem:[#allocation3 + $0x28] sm:$0xff] }
  0x16   :  { %1375 = vmatprep.subr.bf16.mxu0 %v1374_v5  ;;  %v1620_v15 = vpack.c.bf16 %v194_v12, %v193_v11  ;;  %v1382_v16 = vpack.c.bf16 %v53_v14, %v52_v13  ;;  %v54_v17 = vld [vmem:[#allocation3 + $0x30] sm:$0xff]  ;;  %v55_v18 = vld [vmem:[#allocation3 + $0x38] sm:$0xff]  ;;  %v40_v19 = vld [vmem:[%s1791_s0] sm:$0xff] }
  0x17   :  { %1408 = vmatpush3.bf16.msra.mxu1 %v1611_v9  ;;  %1377 = vmatpush3.bf16.msra.mxu0 %v1374_v5  ;;  %v1144_v20 = vld [vmem:[%s1795_s4] ss:$0 sm:$0xff]  ;;  %v1386_v21 = vpack.c.bf16 %v55_v18, %v54_v17  ;;  %v57_v23 = vld [vmem:[#allocation3 + $0x48] sm:$0xff]  ;;  %v58_v25 = vld [vmem:[#allocation3 + $0x50] sm:$0xff] }
  0x18   :  { %1409 = vmatprep.subr.bf16.mxu1 %v1544_v0  ;;  %1379 = vmatprep.subr.bf16.mxu0 %v1378_v10  ;;  %v56_v22 = vld [vmem:[#allocation3 + $0x40] sm:$0xff]  ;;  %v59_v26 = vld [vmem:[#allocation3 + $0x58] sm:$0xff]  ;;  %v61_v29 = vld [vmem:[#allocation3 + $0x68] sm:$0xff] }
  0x19   :  { %1263 = vmatprep.mubr.f32.mxu0 %v40_v19  ;;  %276 = vrot.lane.b32.xlu0 %v1144_v20, %s1547_s25  ;;  %v1390_v24 = vpack.c.bf16 %v57_v23, %v56_v22  ;;  %v1394_v27 = vpack.c.bf16 %v59_v26, %v58_v25  ;;  %v60_v28 = vld [vmem:[#allocation3 + $0x60] sm:$0xff]  ;;  %v62_v31 = vld [vmem:[#allocation3 + $0x70] sm:$0xff]  ;;  %v63_v32 = vld [vmem:[#allocation3 + $0x78] sm:$0xff] }
  0x1a   :  { %v1398_v30 = vpack.c.bf16 %v61_v29, %v60_v28  ;;  %v1402_v33 = vpack.c.bf16 %v63_v32, %v62_v31  ;;  %v41_v34 = vld [vmem:[%s1791_s0 + $0x8] sm:$0xff]  ;;  %v1654_v41 = vld [vmem:[%s1794_s3] ss:$0 sm:$0xff]  ;;  %s1548_s3 = smov 96   ;;  %v42_v13 = vld [vmem:[%s1791_s0 + $0x10] sm:$0xff] }
  0x1b   :  { %1411 = vmatpush3.bf16.msra.mxu1 %v1620_v15  ;;  %1381 = vmatpush3.bf16.msra.mxu0 %v1378_v10  ;;  %v43_v14 = vld [vmem:[%s1791_s0 + $0x18] sm:$0xff] }
  0x1c   :  { %1383 = vmatprep.subr.bf16.mxu0 %v1382_v16  ;;  %1412 = vmatprep.subr.bf16.mxu1 %v1544_v0 }
  0x1e   :  { %1284 = vmatmul.mubr.f32.vlgmr.msra.gmra.mrb[0].mxu1 %v1546_v1 }
  0x1f   :  { %1385 = vmatpush3.bf16.msra.mxu0 %v1382_v16  ;;  %1414 = vmatpush3.bf16.msra.mxu1 %v1611_v9 }
  0x20   :  { %1387 = vmatprep.subr.bf16.mxu0 %v1386_v21  ;;  %1415 = vmatprep.subr.bf16.mxu1 %v1544_v0 }
  0x21   :  { %1294 = vmatprep.mubr.msk.f32.mxu1 %vm1545_vm0, %v1546_v1 }
  0x23   :  { %1389 = vmatpush3.bf16.msra.mxu0 %v1386_v21  ;;  %1417 = vmatpush3.bf16.msra.mxu1 %v1620_v15 }
  0x24   :  { %1391 = vmatprep.subr.bf16.mxu0 %v1390_v24  ;;  %1418 = vmatprep.subr.bf16.mxu1 %v1544_v0 }
  0x27   :  { %1393 = vmatpush3.bf16.msra.mxu0 %v1390_v24 }
  0x28   :  { %1395 = vmatprep.subr.bf16.mxu0 %v1394_v27 }
  0x2b   :  { %1397 = vmatpush3.bf16.msra.mxu0 %v1394_v27 }
  0x2c   :  { %1399 = vmatprep.subr.bf16.mxu0 %v1398_v30 }
  0x2f   :  { %1401 = vmatpush3.bf16.msra.mxu0 %v1398_v30 }
  0x30   :  { %1403 = vmatprep.subr.bf16.mxu0 %v1402_v33 }
  0x33   :  { %1405 = vmatpush3.bf16.msra.mxu0 %v1402_v33 }
  0x34   :  { %1436 = vmatprep.subr.bf16.mxu0 %v1544_v0 }
  0x36   :  { %1264 = vmatmul.mubr.f32.vlgmr.msra.gmra.mrb[0].mxu0 %v41_v34 }
  0x37   :  { %1438 = vmatpush3.bf16.msra.mxu0 %v1611_v9  ;;  %1266 = vmatprep.mubr.f32.mxu0 %v42_v13 }
  0x38   :  { %1439 = vmatprep.subr.bf16.mxu0 %v1544_v0 }
  0x3a   :  { %1267 = vmatmul.mubr.f32.gmra.mrb[2].mxu0 %v43_v14 }
  0x3b   :  { %1441 = vmatpush3.bf16.msra.mxu0 %v1620_v15 }
  0x3c   :  { %1448 = vmatprep.subr.bf16.mxu0 %v1544_v0 }
  0x8b   :  { %v1647_v35 = vpop.permute.xlu0 %276 }
  0xf1   :  { %v265_v36 = vpop.f32.mrb[0].mxu1 }
  0xf2   :  { %v1285_v37 = vpop.f32.mrb[1].mxu1  ;;  %v279_v38 = vadd.f32 %v1647_v35, %v265_v36 }
  0xf4   :  { %281 = vrot.lane.b32.xlu0 %v279_v38, %s1547_s25 }
 0x109   :  { %v1265_v39 = vpop.f32.mrb[0].mxu0 }
 0x10a   :  { %v137_v40 = vpop.f32.mrb[1].mxu0  ;;  %v143_v62 = vadd.f32 %v1265_v39, %v1654_v41 }
 0x10b   :  { %v138_v42 = vadd.f32 %v1654_v41, %v137_v40 }
 0x10d   :  { %v269_v43 = vadd.f32 %v265_v36, %v138_v42  ;;  %v1268_v20 = vpop.f32.mrb[2].mxu0 }
 0x10e   :  { %v147_v21 = vpop.f32.mrb[3].mxu0 }
 0x10f   :  { %v1145_v44 = vmul.f32 -1.442695, %v269_v43  ;;  %v148_v26 = vadd.f32 %v1654_v41, %v147_v21 }
 0x111   :  { %1469 = vpow2.f32 %v1145_v44 }
 0x11b   :  { %v1470_v45 = vpop.eup %1469 }
 0x11c   :  { %v273_v46 = vadd.f32 1.0, %v1470_v45 }
 0x11e   :  { %1471 = vrcp.f32 %v273_v46 }
 0x128   :  { %v1472_v47 = vpop.eup %1471 }
 0x166   :  { %v282_v48 = vpop.permute.xlu0 %281 }
 0x167   :  { %v284_v49 = vmul.f32 %v1472_v47, %v282_v48  ;;  %v153_v48 = vadd.f32 %v1268_v20, %v1654_v41 }
 0x169   :  { %286 = vrot.lane.b32.xlu1 %v284_v49, %s1547_s25 }
 0x1db   :  { %v287_v50 = vpop.permute.xlu1 %286 }
 0x1dc   :  { %v289_v51 = vadd.f32 %v287_v50, %v138_v42 }
 0x1de   :  { %1473 = vtanh.f32 %v289_v51 }
 0x1e8   :  { %v1474_v52 = vpop.eup %1473 }
 0x1e9   :  { %v291_v53 = vsub.f32 0.0, %v1474_v52 }
 0x1eb   :  { %293 = vrot.lane.b32.xlu1 %v291_v53, %s1548_s3 }
 0x25d   :  { %v294_v54 = vpop.permute.xlu1 %293 }
 0x25e   :  { %v296_v55 = vmul.f32 %v1472_v47, %v294_v54 }
 0x260   :  { %298 = vrot.lane.b32.xlu0 %v296_v55, %s1549_s29 }
 0x2d2   :  { %v299_v56 = vpop.permute.xlu0 %298 }
 0x2d3   :  { %v301_v57 = vadd.f32 %v1474_v52, %v299_v56 }
 0x2d5   :  { %305 = vrot.lane.b32.xlu1 %v301_v57, %s1547_s25 }
 0x347   :  { %v306_v58 = vpop.permute.xlu1 %305 }
 0x348   :  { %1295 = vmatmul.mubr.msk.f32.vlgmr.msra.gmra.mrb[2].mxu1 %vm195_vm1, %v306_v58 }
 0x349   :  { %1420 = vmatpush3.bf16.msra.mxu1 %v1611_v9  ;;  %1305 = vmatprep.mubr.msk.f32.mxu1 %vm1545_vm0, %v1546_v1 }
 0x34a   :  { %1421 = vmatprep.subr.bf16.mxu1 %v1544_v0 }
 0x34d   :  { %1423 = vmatpush3.bf16.msra.mxu1 %v1620_v15 }
 0x34e   :  { %1424 = vmatprep.subr.bf16.mxu1 %v1544_v0 }
 0x41b   :  { %v375_v59 = vpop.f32.mrb[2].mxu1 }
 0x41c   :  { %v386_v60 = vadd.f32 %v375_v59, %v1647_v35  ;;  %v1296_v61 = vpop.f32.mrb[3].mxu1  ;;  %v379_v63 = vadd.f32 %v375_v59, %v143_v62 }
 0x41d   :  { %v45_v61 = vld [vmem:[%s1791_s0 + $0x28] sm:$0xff] }
 0x41e   :  { %388 = vrot.lane.b32.xlu0 %v386_v60, %s1547_s25  ;;  %v1147_v2 = vmul.f32 -1.442695, %v379_v63  ;;  %v44_v60 = vld [vmem:[%s1791_s0 + $0x20] sm:$0xff] }
 0x41f   :  { %1269 = vmatprep.mubr.f32.mxu0 %v44_v60 }
 0x420   :  { %1475 = vpow2.f32 %v1147_v2  ;;  %1270 = vmatmul.mubr.f32.gmra.mrb[4].mxu0 %v45_v61 }
 0x42a   :  { %v1476_v3 = vpop.eup %1475 }
 0x42b   :  { %v383_v4 = vadd.f32 1.0, %v1476_v3 }
 0x42d   :  { %1477 = vrcp.f32 %v383_v4 }
 0x437   :  { %v1478_v5 = vpop.eup %1477 }
 0x490   :  { %v389_v6 = vpop.permute.xlu0 %388 }
 0x491   :  { %v391_v7 = vmul.f32 %v1478_v5, %v389_v6 }
 0x493   :  { %393 = vrot.lane.b32.xlu1 %v391_v7, %s1547_s25 }
 0x4f3   :  { %v1271_v4 = vpop.f32.mrb[4].mxu0 }
 0x505   :  { %v394_v8 = vpop.permute.xlu1 %393 }
 0x506   :  { %v396_v10 = vadd.f32 %v394_v8, %v143_v62 }
 0x508   :  { %1479 = vtanh.f32 %v396_v10 }
 0x512   :  { %v1480_v11 = vpop.eup %1479 }
 0x513   :  { %v398_v12 = vsub.f32 %v301_v57, %v1480_v11 }
 0x515   :  { %400 = vrot.lane.b32.xlu0 %v398_v12, %s1548_s3 }
 0x587   :  { %v401_v16 = vpop.permute.xlu0 %400 }
 0x588   :  { %v403_v17 = vmul.f32 %v1478_v5, %v401_v16  ;;  %v157_v5 = vpop.f32.mrb[5].mxu0 }
 0x58a   :  { %405 = vrot.lane.b32.xlu1 %v403_v17, %s1549_s29 }
 0x5fc   :  { %v406_v18 = vpop.permute.xlu1 %405 }
 0x5fd   :  { %v408_v19 = vadd.f32 %v1480_v11, %v406_v18  ;;  %v158_v11 = vadd.f32 %v1654_v41, %v157_v5 }
 0x5ff   :  { %412 = vrot.lane.b32.xlu0 %v408_v19, %s1547_s25 }
 0x671   :  { %v413_v22 = vpop.permute.xlu0 %412 }
 0x672   :  { %1306 = vmatmul.mubr.msk.f32.vlgmr.msra.gmra.mrb[4].mxu1 %vm195_vm1, %v413_v22 }
 0x673   :  { %1426 = vmatpush3.bf16.msra.mxu1 %v1611_v9  ;;  %1316 = vmatprep.mubr.msk.f32.mxu1 %vm1545_vm0, %v1546_v1 }
 0x674   :  { %1427 = vmatprep.subr.bf16.mxu1 %v1544_v0 }
 0x677   :  { %1429 = vmatpush3.bf16.msra.mxu1 %v1620_v15 }
 0x678   :  { %1430 = vmatprep.subr.bf16.mxu1 %v1544_v0 }
 0x745   :  { %v482_v23 = vpop.f32.mrb[4].mxu1 }
 0x746   :  { %v493_v24 = vadd.f32 %v482_v23, %v1647_v35  ;;  %v1307_v25 = vpop.f32.mrb[5].mxu1  ;;  %v486_v27 = vadd.f32 %v482_v23, %v148_v26 }
 0x747   :  { %v47_v25 = vld [vmem:[%s1791_s0 + $0x38] sm:$0xff] }
 0x748   :  { %495 = vrot.lane.b32.xlu1 %v493_v24, %s1547_s25  ;;  %v1149_v28 = vmul.f32 -1.442695, %v486_v27  ;;  %v46_v24 = vld [vmem:[%s1791_s0 + $0x30] sm:$0xff] }
 0x749   :  { %1272 = vmatprep.mubr.f32.mxu0 %v46_v24 }
 0x74a   :  { %1481 = vpow2.f32 %v1149_v28  ;;  %1273 = vmatmul.mubr.f32.gmra.mrb[6].mxu0 %v47_v25 }
 0x74b   :  { %1338 = vmatprep.mubr.msk.f32.mxu0 %vm1545_vm0, %v1546_v1 }
 0x754   :  { %v1482_v29 = vpop.eup %1481 }
 0x755   :  { %v490_v30 = vadd.f32 1.0, %v1482_v29 }
 0x757   :  { %1483 = vrcp.f32 %v490_v30 }
 0x761   :  { %v1484_v31 = vpop.eup %1483 }
 0x7ba   :  { %v496_v32 = vpop.permute.xlu1 %495 }
 0x7bb   :  { %v498_v33 = vmul.f32 %v1484_v31, %v496_v32 }
 0x7bd   :  { %500 = vrot.lane.b32.xlu0 %v498_v33, %s1547_s25 }
 0x81d   :  { %v1737_v30 = vpop.f32.mrb[6].mxu0 }
 0x82f   :  { %v501_v34 = vpop.permute.xlu0 %500 }
 0x830   :  { %v503_v36 = vadd.f32 %v501_v34, %v148_v26 }
 0x832   :  { %1485 = vtanh.f32 %v503_v36 }
 0x83c   :  { %v1486_v37 = vpop.eup %1485 }
 0x83d   :  { %v505_v38 = vsub.f32 %v408_v19, %v1486_v37 }
 0x83f   :  { %507 = vrot.lane.b32.xlu1 %v505_v38, %s1548_s3 }
 0x8b1   :  { %v508_v39 = vpop.permute.xlu1 %507 }
 0x8b2   :  { %v510_v40 = vmul.f32 %v1484_v31, %v508_v39  ;;  %v167_v31 = vpop.f32.mrb[7].mxu0 }
 0x8b4   :  { %512 = vrot.lane.b32.xlu0 %v510_v40, %s1549_s29 }
 0x926   :  { %v513_v42 = vpop.permute.xlu0 %512 }
 0x927   :  { %v515_v43 = vadd.f32 %v1486_v37, %v513_v42  ;;  %v163_v37 = vadd.f32 %v1271_v4, %v1654_v41 }
 0x929   :  { %519 = vrot.lane.b32.xlu1 %v515_v43, %s1547_s25 }
 0x99b   :  { %v520_v44 = vpop.permute.xlu1 %519 }
 0x99c   :  { %1317 = vmatmul.mubr.msk.f32.vlgmr.msra.gmra.mrb[6].mxu1 %vm195_vm1, %v520_v44 }
 0x99d   :  { %1432 = vmatpush3.bf16.msra.mxu1 %v1611_v9  ;;  %1327 = vmatprep.mubr.msk.f32.mxu1 %vm1545_vm0, %v1546_v1 }
 0x99e   :  { %1433 = vmatprep.subr.bf16.mxu1 %v1544_v0 }
 0x9a1   :  { %1435 = vmatpush3.bf16.msra.mxu1 %v1620_v15 }
 0x9a2   :  { %1442 = vmatprep.subr.bf16.mxu1 %v1544_v0 }
 0xa6f   :  { %v589_v45 = vpop.f32.mrb[6].mxu1 }
 0xa70   :  { %v600_v46 = vadd.f32 %v589_v45, %v1647_v35  ;;  %v1318_v47 = vpop.f32.mrb[7].mxu1  ;;  %v593_v49 = vadd.f32 %v589_v45, %v153_v48 }
 0xa72   :  { %602 = vrot.lane.b32.xlu0 %v600_v46, %s1547_s25  ;;  %v1151_v50 = vmul.f32 -1.442695, %v593_v49 }
 0xa74   :  { %1487 = vpow2.f32 %v1151_v50 }
 0xa7e   :  { %v1488_v51 = vpop.eup %1487 }
 0xa7f   :  { %v597_v52 = vadd.f32 1.0, %v1488_v51 }
 0xa81   :  { %1489 = vrcp.f32 %v597_v52 }
 0xa8b   :  { %v1490_v53 = vpop.eup %1489 }
 0xae4   :  { %v603_v54 = vpop.permute.xlu0 %602 }
 0xae5   :  { %v605_v55 = vmul.f32 %v1490_v53, %v603_v54 }
 0xae7   :  { %607 = vrot.lane.b32.xlu1 %v605_v55, %s1547_s25 }
 0xb59   :  { %v608_v56 = vpop.permute.xlu1 %607 }
 0xb5a   :  { %v610_v57 = vadd.f32 %v608_v56, %v153_v48  ;;  %v168_v56 = vadd.f32 %v1654_v41, %v167_v31 }
 0xb5c   :  { %1491 = vtanh.f32 %v610_v57 }
 0xb66   :  { %v1492_v58 = vpop.eup %1491 }
 0xb67   :  { %v612_v59 = vsub.f32 %v515_v43, %v1492_v58 }
 0xb69   :  { %614 = vrot.lane.b32.xlu0 %v612_v59, %s1548_s3 }
 0xbdb   :  { %v615_v62 = vpop.permute.xlu0 %614 }
 0xbdc   :  { %v617_v63 = vmul.f32 %v1490_v53, %v615_v62 }
 0xbde   :  { %619 = vrot.lane.b32.xlu1 %v617_v63, %s1549_s29 }
 0xc50   :  { %v620_v2 = vpop.permute.xlu1 %619 }
 0xc51   :  { %v622_v3 = vadd.f32 %v1492_v58, %v620_v2 }
 0xc53   :  { %626 = vrot.lane.b32.xlu0 %v622_v3, %s1547_s25 }
 0xcc5   :  { %v627_v6 = vpop.permute.xlu0 %626 }
 0xcc6   :  { %1328 = vmatmul.mubr.msk.f32.vlgmr.msra.gmra.mrb[8].mxu1 %vm195_vm1, %v627_v6 }
 0xcc7   :  { %1444 = vmatpush3.bf16.msra.mxu1 %v1611_v9  ;;  %1349 = vmatprep.mubr.msk.f32.mxu1 %vm1545_vm0, %v1546_v1 }
 0xcc8   :  { %1445 = vmatprep.subr.bf16.mxu1 %v1544_v0 }
 0xccb   :  { %1447 = vmatpush3.bf16.msra.mxu1 %v1620_v15 }
 0xccc   :  { %1454 = vmatprep.subr.bf16.mxu1 %v1544_v0 }
 0xd99   :  { %v696_v7 = vpop.f32.mrb[8].mxu1 }
 0xd9a   :  { %v707_v8 = vadd.f32 %v696_v7, %v1647_v35  ;;  %v1329_v10 = vpop.f32.mrb[9].mxu1  ;;  %v700_v12 = vadd.f32 %v696_v7, %v158_v11 }
 0xd9c   :  { %709 = vrot.lane.b32.xlu1 %v707_v8, %s1547_s25  ;;  %v1153_v13 = vmul.f32 -1.442695, %v700_v12 }
 0xd9e   :  { %1493 = vpow2.f32 %v1153_v13 }
 0xda8   :  { %v1494_v14 = vpop.eup %1493 }
 0xda9   :  { %v704_v16 = vadd.f32 1.0, %v1494_v14  ;;  %v173_v14 = vadd.f32 %v1737_v30, %v1654_v41  ;;  %v1051_v41 = vld [vmem:[%s1796_s5] sm:$0xff] }
 0xdab   :  { %1495 = vrcp.f32 %v704_v16 }
 0xdb5   :  { %v1496_v17 = vpop.eup %1495 }
 0xe0e   :  { %v710_v18 = vpop.permute.xlu1 %709 }
 0xe0f   :  { %v712_v19 = vmul.f32 %v1496_v17, %v710_v18 }
 0xe11   :  { %714 = vrot.lane.b32.xlu0 %v712_v19, %s1547_s25 }
 0xe83   :  { %v715_v20 = vpop.permute.xlu0 %714 }
 0xe84   :  { %v717_v21 = vadd.f32 %v715_v20, %v158_v11 }
 0xe86   :  { %1497 = vtanh.f32 %v717_v21 }
 0xe90   :  { %v1498_v22 = vpop.eup %1497 }
 0xe91   :  { %v719_v23 = vsub.f32 %v622_v3, %v1498_v22 }
 0xe93   :  { %721 = vrot.lane.b32.xlu1 %v719_v23, %s1548_s3 }
 0xf05   :  { %v722_v26 = vpop.permute.xlu1 %721 }
 0xf06   :  { %v724_v27 = vmul.f32 %v1496_v17, %v722_v26  ;;  %v1052_v26 = vld [vmem:[%s1796_s5 + $0x8] sm:$0xff] }
 0xf08   :  { %726 = vrot.lane.b32.xlu0 %v724_v27, %s1549_s29  ;;  %v1053_v27 = vld [vmem:[%s1796_s5 + $0x10] sm:$0xff] }
 0xf7a   :  { %v727_v28 = vpop.permute.xlu0 %726 }
 0xf7b   :  { %v729_v29 = vadd.f32 %v1498_v22, %v727_v28  ;;  %v1455_v28 = vpack.c.bf16 %v1052_v26, %v1051_v41 }
 0xf7d   :  { %733 = vrot.lane.b32.xlu1 %v729_v29, %s1547_s25 }
 0xfef   :  { %v734_v32 = vpop.permute.xlu1 %733 }
 0xff0   :  { %1339 = vmatmul.mubr.msk.f32.vlgmr.msra.gmra.mrb[8].mxu0 %vm195_vm1, %v734_v32 }
 0xff1   :  { %1450 = vmatpush3.bf16.msra.mxu0 %v1611_v9  ;;  %1360 = vmatprep.mubr.msk.f32.mxu0 %vm1545_vm0, %v1546_v1 }
 0xff2   :  { %1451 = vmatprep.subr.bf16.mxu0 %v1544_v0 }
 0xff5   :  { %1453 = vmatpush3.bf16.msra.mxu0 %v1620_v15 }
0x10c3   :  { %v803_v33 = vpop.f32.mrb[8].mxu0 }
0x10c4   :  { %v814_v34 = vadd.f32 %v803_v33, %v1647_v35  ;;  %v1340_v36 = vpop.f32.mrb[9].mxu0  ;;  %v807_v38 = vadd.f32 %v803_v33, %v163_v37 }
0x10c6   :  { %816 = vrot.lane.b32.xlu0 %v814_v34, %s1547_s25  ;;  %v1155_v39 = vmul.f32 -1.442695, %v807_v38 }
0x10c8   :  { %1499 = vpow2.f32 %v1155_v39 }
0x10d2   :  { %v1500_v40 = vpop.eup %1499 }
0x10d3   :  { %v811_v9 = vadd.f32 1.0, %v1500_v40 }
0x10d5   :  { %1501 = vrcp.f32 %v811_v9 }
0x10df   :  { %v1502_v42 = vpop.eup %1501 }
0x1138   :  { %v817_v43 = vpop.permute.xlu0 %816 }
0x1139   :  { %v819_v44 = vmul.f32 %v1502_v42, %v817_v43 }
0x113b   :  { %821 = vrot.lane.b32.xlu1 %v819_v44, %s1547_s25 }
0x11ad   :  { %v822_v15 = vpop.permute.xlu1 %821 }
0x11ae   :  { %v824_v45 = vadd.f32 %v822_v15, %v163_v37  ;;  %v1160_v37 = vld [vmem:[%s1797_s6] ss:$0 sm:$0xff] }
0x11b0   :  { %1503 = vtanh.f32 %v824_v45 }
0x11ba   :  { %v1504_v46 = vpop.eup %1503 }
0x11bb   :  { %v826_v47 = vsub.f32 %v729_v29, %v1504_v46  ;;  %v1054_v29 = vld [vmem:[%s1796_s5 + $0x18] sm:$0xff] }
0x11bc   :  { %v1458_v30 = vpack.c.bf16 %v1054_v29, %v1053_v27 }
0x11bd   :  { %828 = vrot.lane.b32.xlu0 %v826_v47, %s1548_s3 }
0x122f   :  { %v829_v48 = vpop.permute.xlu0 %828 }
0x1230   :  { %v831_v49 = vmul.f32 %v1502_v42, %v829_v48 }
0x1232   :  { %833 = vrot.lane.b32.xlu1 %v831_v49, %s1549_s29 }
0x12a4   :  { %v834_v50 = vpop.permute.xlu1 %833 }
0x12a5   :  { %v836_v51 = vadd.f32 %v1504_v46, %v834_v50 }
0x12a7   :  { %840 = vrot.lane.b32.xlu0 %v836_v51, %s1547_s25 }
0x1319   :  { %v841_v52 = vpop.permute.xlu0 %840 }
0x131a   :  { %1350 = vmatmul.mubr.msk.f32.vlgmr.msra.gmra.mrb[10].mxu1 %vm195_vm1, %v841_v52 }
0x131b   :  { %1371 = vmatprep.mubr.msk.f32.mxu1 %vm1545_vm0, %v1546_v1  ;;  %1456 = vmatpush3.bf16.msra.mxu1 %v1455_v28 }
0x131c   :  { %1457 = vmatprep.subr.bf16.mxu1 %v1544_v0 }
0x131f   :  { %1459 = vmatpush3.bf16.msra.mxu1 %v1458_v30 }
0x13ed   :  { %v910_v53 = vpop.f32.mrb[10].mxu1 }
0x13ee   :  { %v921_v54 = vadd.f32 %v910_v53, %v1647_v35  ;;  %v1351_v55 = vpop.f32.mrb[11].mxu1  ;;  %v914_v57 = vadd.f32 %v910_v53, %v168_v56 }
0x13f0   :  { %923 = vrot.lane.b32.xlu1 %v921_v54, %s1547_s25  ;;  %v1157_v58 = vmul.f32 -1.442695, %v914_v57 }
0x13f2   :  { %1505 = vpow2.f32 %v1157_v58 }
0x13fc   :  { %v1506_v59 = vpop.eup %1505 }
0x13fd   :  { %v918_v60 = vadd.f32 1.0, %v1506_v59 }
0x13ff   :  { %1507 = vrcp.f32 %v918_v60 }
0x1409   :  { %v1508_v61 = vpop.eup %1507 }
0x1462   :  { %v924_v62 = vpop.permute.xlu1 %923 }
0x1463   :  { %v926_v63 = vmul.f32 %v1508_v61, %v924_v62 }
0x1465   :  { %928 = vrot.lane.b32.xlu0 %v926_v63, %s1547_s25 }
0x14d7   :  { %v929_v1 = vpop.permute.xlu0 %928 }
0x14d8   :  { %v931_v2 = vadd.f32 %v929_v1, %v168_v56 }
0x14da   :  { %1509 = vtanh.f32 %v931_v2 }
0x14e4   :  { %v1510_v3 = vpop.eup %1509 }
0x14e5   :  { %v933_v4 = vsub.f32 %v836_v51, %v1510_v3 }
0x14e7   :  { %935 = vrot.lane.b32.xlu1 %v933_v4, %s1548_s3 }
0x1559   :  { %v936_v5 = vpop.permute.xlu1 %935 }
0x155a   :  { %v938_v6 = vmul.f32 %v1508_v61, %v936_v5 }
0x155c   :  { %940 = vrot.lane.b32.xlu0 %v938_v6, %s1549_s29 }
0x15ce   :  { %v941_v7 = vpop.permute.xlu0 %940 }
0x15cf   :  { %v943_v8 = vadd.f32 %v1510_v3, %v941_v7 }
0x15d1   :  { %947 = vrot.lane.b32.xlu1 %v943_v8, %s1547_s25 }
0x1643   :  { %v948_v10 = vpop.permute.xlu1 %947 }
0x1644   :  { %1361 = vmatmul.mubr.msk.f32.vlgmr.msra.gmra.mrb[10].mxu0 %vm195_vm1, %v948_v10 }
0x1717   :  { %v1017_v11 = vpop.f32.mrb[10].mxu0 }
0x1718   :  { %v1028_v12 = vadd.f32 %v1017_v11, %v1647_v35  ;;  %v1362_v13 = vpop.f32.mrb[11].mxu0  ;;  %v1021_v16 = vadd.f32 %v1017_v11, %v173_v14 }
0x171a   :  { %1030 = vrot.lane.b32.xlu0 %v1028_v12, %s1547_s25  ;;  %v1159_v17 = vmul.f32 -1.442695, %v1021_v16 }
0x171c   :  { %1511 = vpow2.f32 %v1159_v17 }
0x1726   :  { %v1512_v18 = vpop.eup %1511 }
0x1727   :  { %v1025_v19 = vadd.f32 1.0, %v1512_v18 }
0x1729   :  { %1513 = vrcp.f32 %v1025_v19 }
0x1733   :  { %v1514_v20 = vpop.eup %1513 }
0x178c   :  { %v1031_v21 = vpop.permute.xlu0 %1030 }
0x178d   :  { %v1033_v22 = vmul.f32 %v1514_v20, %v1031_v21 }
0x178f   :  { %1035 = vrot.lane.b32.xlu1 %v1033_v22, %s1547_s25 }
0x1801   :  { %v1036_v23 = vpop.permute.xlu1 %1035 }
0x1802   :  { %v1038_v24 = vadd.f32 %v1036_v23, %v173_v14 }
0x1804   :  { %1515 = vtanh.f32 %v1038_v24 }
0x180e   :  { %v1516_v35 = vpop.eup %1515 }
0x180f   :  { %v1040_v25 = vsub.f32 %v943_v8, %v1516_v35 }
0x1811   :  { %1042 = vrot.lane.b32.xlu0 %v1040_v25, %s1548_s3 }
0x1883   :  { %v1043_v31 = vpop.permute.xlu0 %1042 }
0x1884   :  { %v1045_v32 = vmul.f32 %v1514_v20, %v1043_v31 }
0x1886   :  { %1047 = vrot.lane.b32.xlu1 %v1045_v32, %s1549_s29 }
0x18f8   :  { %v1048_v33 = vpop.permute.xlu1 %1047 }
0x18f9   :  { %v1050_v34 = vadd.f32 %v1516_v35, %v1048_v33 }
0x18fb   :  { %1063 = vrot.lane.b32.xlu0 %v1050_v34, %s1547_s25 }
0x196d   :  { %v1064_v36 = vpop.permute.xlu0 %1063 }
0x196e   :  { %1372 = vmatmul.mubr.msk.f32.vlgmr.msra.gmra.mrb[12].mxu1 %vm195_vm1, %v1064_v36 }
0x1a41   :  { %v1133_v38 = vpop.f32.mrb[12].mxu1 }
0x1a42   :  { %v1134_v39 = vadd.f32 %v1160_v37, %v1133_v38  ;;  %v1373_v40 = vpop.f32.mrb[13].mxu1 }
0x1a44   :  { %1137 = vst [vmem:[%s1798_s7] sm:$0xff] %v1134_v39 }
0x1a45   :  { %1142 = vsyncpa [#allocation4], 1 }

</bundles_post_ra>
